<compile_context>
chip_gen: v6e
topology: v6e:2x2x1
jax: 0.10.0
libtpu: 0.0.40
codegen_flags: <defaults>
</compile_context>

<pallas_src>
import numpy as np

import jax
import jax.numpy as jnp
from jax.experimental import pallas as pl
from jax.experimental.pallas import tpu as pltpu

EPS = 1e-5          # torch BatchNorm1d default eps
ROW_TILE = 256      # points per grid step


def _round_up(x, m):
  return (x + m - 1) // m * m


# ---------------------------------------------------------------------------
# Pass 1: conv-as-matmul + per-tile BatchNorm partial statistics.
# ---------------------------------------------------------------------------
def conv_stats_kernel(xg_ref, w_ref, y_ref, part_ref):
  # xg_ref : (TN, Kp)   gathered (im2col) features for this row tile
  # w_ref  : (Kp, Cp)   flattened conv weight (constant block -> VMEM-resident)
  # y_ref  : (TN, Cp)   conv output tile
  # part_ref:(1, 8, Cp) per-tile partials (row0 = sum, row1 = sum of squares)
  y = jnp.dot(xg_ref[...], w_ref[...], preferred_element_type=jnp.float32)
  y_ref[...] = y
  s = jnp.sum(y, axis=0, keepdims=True)            # (1, Cp)
  ss = jnp.sum(y * y, axis=0, keepdims=True)       # (1, Cp)
  pad = jnp.zeros((6, y.shape[1]), jnp.float32)
  part_ref[...] = jnp.concatenate([s, ss, pad], axis=0)[None]


# ---------------------------------------------------------------------------
# Pass 2: BatchNorm affine (precomputed scale/shift slab) + ReLU.
# ---------------------------------------------------------------------------
def bn_relu_kernel(y_ref, bn_ref, o_ref):
  scale = bn_ref[0:1, :]     # (1, Cp)
  shift = bn_ref[1:2, :]     # (1, Cp)
  o_ref[...] = jnp.maximum(y_ref[...] * scale + shift, 0.0)


def basic_convolution_block(x, nbr, mask, weight, gamma, beta, *,
                            row_tile=ROW_TILE):
  """Sparse Conv3d + BatchNorm (training-mode batch stats) + ReLU.

  x      : (N, inc)  f32 point features
  nbr    : (N, K)    int32 neighbor index per kernel offset
  mask   : (N, K)    f32 kernel-map validity mask
  weight : (K, inc, outc) f32 conv weight (no bias, torchsparse default)
  gamma, beta : (outc,) BatchNorm affine
  returns (N, outc) f32
  """
  N, inc = x.shape
  K = nbr.shape[1]
  outc = weight.shape[-1]

  # ---- host-side layout plumbing: im2col gather + lane-dense padding --------
  # TODO(synk): the data-dependent neighbor gather has no clean Pallas
  # equivalent here; it is done as a plain-JAX jnp.take (im2col) before the call.
  xg = jnp.take(x, nbr, axis=0) * mask[..., None]          # (N, K, inc)
  xg = xg.reshape(N, K * inc)

  Kp = _round_up(K * inc, 128)
  Cp = _round_up(max(outc, 128), 128)
  Np = _round_up(N, row_tile)
  grid = Np // row_tile

  xg = jnp.pad(xg, ((0, Np - N), (0, Kp - K * inc)))
  wf = jnp.pad(weight.reshape(K * inc, outc),
               ((0, Kp - K * inc), (0, Cp - outc)))

  cparams = pltpu.CompilerParams(
      dimension_semantics=("parallel",),             # v7x: 2 TCs split the tiles
      vmem_limit_bytes=32 * 1024 * 1024)

  # ---- pass 1: conv matmul + per-tile BN partials ---------------------------
  y_pad, partials = pl.pallas_call(
      conv_stats_kernel,
      out_shape=(jax.ShapeDtypeStruct((Np, Cp), jnp.float32),
                 jax.ShapeDtypeStruct((grid, 8, Cp), jnp.float32)),
      grid=(grid,),
      in_specs=[pl.BlockSpec((row_tile, Kp), lambda i: (i, 0)),
                pl.BlockSpec((Kp, Cp), lambda i: (0, 0))],
      out_specs=(pl.BlockSpec((row_tile, Cp), lambda i: (i, 0)),
                 pl.BlockSpec((1, 8, Cp), lambda i: (i, 0, 0))),
      compiler_params=cparams,
  )(xg, wf)

  # ---- tiny cross-tile reduction + fused BN scale/shift ((1, Cp) math) ------
  s = jnp.sum(partials[:, 0, :], axis=0)             # (Cp,)
  ss = jnp.sum(partials[:, 1, :], axis=0)
  mean = s / N                                       # divide by the REAL N;
  var = jnp.maximum(ss / N - mean * mean, 0.0)       # zero-padded rows add 0
  gamma_p = jnp.pad(gamma, (0, Cp - outc))
  beta_p = jnp.pad(beta, (0, Cp - outc))
  scale = gamma_p * jax.lax.rsqrt(var + EPS)
  shift = beta_p - mean * scale
  bn_slab = jnp.zeros((8, Cp), jnp.float32).at[0].set(scale).at[1].set(shift)

  # ---- pass 2: normalize + ReLU ---------------------------------------------
  out_pad = pl.pallas_call(
      bn_relu_kernel,
      out_shape=jax.ShapeDtypeStruct((Np, Cp), jnp.float32),
      grid=(grid,),
      in_specs=[pl.BlockSpec((row_tile, Cp), lambda i: (i, 0)),
                pl.BlockSpec((8, Cp), lambda i: (0, 0))],
      out_specs=pl.BlockSpec((row_tile, Cp), lambda i: (i, 0)),
      compiler_params=cparams,
  )(y_pad, bn_slab)

  return out_pad[:N, :outc]


# ---------------------------------------------------------------------------
# Plain-JAX reference and host-side kernel map.
# ---------------------------------------------------------------------------
def reference_forward(x, nbr, mask, weight, gamma, beta):
  xg = jnp.take(x, nbr, axis=0) * mask[..., None]        # (N, K, inc)
  y = jnp.einsum("nki,kio->no", xg, weight)              # sparse conv (stride 1)
  mean = jnp.mean(y, axis=0, keepdims=True)
  var = jnp.mean((y - mean) ** 2, axis=0, keepdims=True) # biased (training-mode) var
  yn = (y - mean) / jnp.sqrt(var + EPS) * gamma + beta
  return jnp.maximum(yn, 0.0)


def build_kernel_map(coords, ks=3, dilation=1):
  """Neighbor indices + validity mask for a stride-1 sparse conv."""
  # TODO(synk): only stride==1 (output coords == input coords) is implemented;
  # strided / transposed sparse convs change the output active set.
  coords = np.asarray(coords, np.int32)
  n = coords.shape[0]
  table = {tuple(int(v) for v in c): i for i, c in enumerate(coords)}
  r = ks // 2
  offs = [(dx, dy, dz)
          for dx in range(-r, r + 1)
          for dy in range(-r, r + 1)
          for dz in range(-r, r + 1)]
  k_total = len(offs)
  nbr = np.zeros((n, k_total), np.int32)
  mask = np.zeros((n, k_total), np.float32)
  for k, (dx, dy, dz) in enumerate(offs):
    for i in range(n):
      j = table.get((int(coords[i, 0]) + dx * dilation,
                     int(coords[i, 1]) + dy * dilation,
                     int(coords[i, 2]) + dz * dilation), -1)
      if j >= 0:
        nbr[i, k] = j
        mask[i, k] = 1.0
  return jnp.asarray(nbr), jnp.asarray(mask)


if __name__ == "__main__":
  inc, outc, ks = 16, 32, 3

  # Deterministic sparse voxel set: an 8 x 8 x 16 block of coordinates
  # (1024 active sites), randomly permuted so neighbor indices are scrambled.
  xs, ys, zs = np.meshgrid(np.arange(8), np.arange(8), np.arange(16),
                           indexing="ij")
  coords = np.stack([xs, ys, zs], axis=-1).reshape(-1, 3).astype(np.int32)
  N = coords.shape[0]

  key = jax.random.PRNGKey(0)
  k_perm, k_x, k_w, k_g, k_b = jax.random.split(key, 5)
  perm = np.asarray(jax.random.permutation(k_perm, N))
  coords = coords[perm]

  x = jax.random.normal(k_x, (N, inc), jnp.float32)
  K = ks ** 3
  weight = (jax.random.normal(k_w, (K, inc, outc), jnp.float32)
            / np.sqrt(K * inc).astype(np.float32))
  gamma = 1.0 + 0.1 * jax.random.normal(k_g, (outc,), jnp.float32)
  beta = 0.01 * jax.random.normal(k_b, (outc,), jnp.float32)

  nbr, mask = build_kernel_map(coords, ks=ks, dilation=1)

  out = basic_convolution_block(x, nbr, mask, weight, gamma, beta)
  out = jax.block_until_ready(out)

  ref = reference_forward(x, nbr, mask, weight, gamma, beta)
  assert out.shape == (N, outc), out.shape
  max_err = float(jnp.max(jnp.abs(out - ref)))
  assert jnp.allclose(out, ref, atol=1e-3, rtol=1e-3), max_err

  print("KERNEL_OK")
</pallas_src>

<mosaic_0001>
module attributes {stable_mosaic.version = 11 : i64} {
  func.func @conv_stats_kernel(%arg0: i32, %arg1: memref<256x512xf32, #tpu.memory_space<vmem>>, %arg2: memref<512x128xf32, #tpu.memory_space<vmem>>, %arg3: memref<256x128xf32, #tpu.memory_space<vmem>>, %arg4: memref<1x8x128xf32, #tpu.memory_space<vmem>>) attributes {dimension_semantics = [#tpu.dimension_semantics<parallel>], iteration_bounds = array<i64: 4>, scalar_prefetch = 0 : i64, scratch_operands = 0 : i64, tpu.core_type = #tpu.core_type<tc>, window_params = [{transform_indices = @transform_0, window_bounds = array<i64: 256, 512>}, {pipeline_mode = #tpu.pipeline_mode<synchronous>, transform_indices = @transform_1, window_bounds = array<i64: 512, 128>}, {transform_indices = @transform_2, window_bounds = array<i64: 256, 128>}, {transform_indices = @transform_3, window_bounds = array<i64: 1, 8, 128>}]} {
    %c0 = arith.constant 0 : index
    %c0_0 = arith.constant 0 : index
    %0 = vector.load %arg1[%c0, %c0_0] : memref<256x512xf32, #tpu.memory_space<vmem>>, vector<256x512xf32>
    %c0_1 = arith.constant 0 : index
    %c0_2 = arith.constant 0 : index
    %1 = vector.load %arg2[%c0_1, %c0_2] : memref<512x128xf32, #tpu.memory_space<vmem>>, vector<512x128xf32>
    %cst = arith.constant dense<0.000000e+00> : vector<256x128xf32>
    %2 = tpu.matmul %0, %1, %cst {dimension_numbers = #tpu.dot_dimension_numbers<[1], [0], [0], [1], [0, 0, 1, 1], [], []>} : vector<256x512xf32>, vector<512x128xf32>, vector<256x128xf32> -> vector<256x128xf32>
    %c0_3 = arith.constant 0 : index
    %c0_4 = arith.constant 0 : index
    %3 = vector.load %arg3[%c0_3, %c0_4] : memref<256x128xf32, #tpu.memory_space<vmem>>, vector<256x128xf32>
    tpu.vector_store %arg3[%c0_3, %c0_4], %2 {strides = array<i32>} : memref<256x128xf32, #tpu.memory_space<vmem>>, vector<256x128xf32>,
    %cst_5 = arith.constant dense<0.000000e+00> : vector<128xf32>
    %4 = vector.multi_reduction <add>, %2, %cst_5 [0] : vector<256x128xf32> to vector<128xf32>
    %5 = vector.shape_cast %4 : vector<128xf32> to vector<1x128xf32>
    %6 = arith.mulf %2, %2 : vector<256x128xf32>
    %cst_6 = arith.constant dense<0.000000e+00> : vector<128xf32>
    %7 = vector.multi_reduction <add>, %6, %cst_6 [0] : vector<256x128xf32> to vector<128xf32>
    %8 = vector.shape_cast %7 : vector<128xf32> to vector<1x128xf32>
    %cst_7 = arith.constant 0.000000e+00 : f32
    %9 = vector.broadcast %cst_7 : f32 to vector<6x128xf32>
    %10 = tpu.concatenate %5, %8, %9 in 0 : vector<1x128xf32>, vector<1x128xf32>, vector<6x128xf32> -> vector<8x128xf32>
    %11 = vector.shape_cast %10 : vector<8x128xf32> to vector<1x8x128xf32>
    %c0_8 = arith.constant 0 : index
    %c0_9 = arith.constant 0 : index
    %c0_10 = arith.constant 0 : index
    %12 = vector.load %arg4[%c0_8, %c0_9, %c0_10] : memref<1x8x128xf32, #tpu.memory_space<vmem>>, vector<1x8x128xf32>
    tpu.vector_store %arg4[%c0_8, %c0_9, %c0_10], %11 {strides = array<i32>} : memref<1x8x128xf32, #tpu.memory_space<vmem>>, vector<1x8x128xf32>,
    return
  }
  func.func @transform_0(%arg0: i32) -> (i32, i32) {
    %c0_i32 = arith.constant 0 : i32
    %c0_i32_0 = arith.constant 0 : i32
    return %arg0, %c0_i32 : i32, i32
  }
  func.func @transform_1(%arg0: i32) -> (i32, i32) {
    %c0_i32 = arith.constant 0 : i32
    %c0_i32_0 = arith.constant 0 : i32
    %c0_i32_1 = arith.constant 0 : i32
    return %c0_i32, %c0_i32_0 : i32, i32
  }
  func.func @transform_2(%arg0: i32) -> (i32, i32) {
    %c0_i32 = arith.constant 0 : i32
    %c0_i32_0 = arith.constant 0 : i32
    return %arg0, %c0_i32 : i32, i32
  }
  func.func @transform_3(%arg0: i32) -> (i32, i32, i32) {
    %c0_i32 = arith.constant 0 : i32
    %c0_i32_0 = arith.constant 0 : i32
    %c0_i32_1 = arith.constant 0 : i32
    return %arg0, %c0_i32, %c0_i32_0 : i32, i32, i32
  }
}

</mosaic_0001>

<bundles_post_ra>
// kernel: tpu_custom_call.1
= control target key start
LH: loop header
LB: loop body
LE: loop exit
PB: predicated region body
PF: predicated region fallthrough
CT: control target
= control target key end

     0   :  { %9 = vsyncpa [#allocation3], 0  ;;  %s1988_s0 = inlined_call_operand.hbm [shape: f32[1024,512], index: 0, kind: input, shape index: {}]   ;;  %s1989_s1 = inlined_call_operand.hbm [shape: f32[512,128], index: 1, kind: input, shape index: {}]   ;;  %s1990_s2 = inlined_call_operand.hbm [shape: f32[1024,128], index: 2, kind: output, shape index: {0}]   ;;  %s1991_s3 = inlined_call_operand.hbm [shape: f32[4,8,128], index: 3, kind: output, shape index: {1}]  }
   0x1   :  { %11 = vsyncpa [#allocation3 + $0x1], 0 }
   0x2   :  { %12 = vsyncpa [#allocation6], 0 }
   0x3   :  { %13 = vsyncpa [#allocation4], 0 }
   0x4   :  { %15 = vsyncpa [#allocation4 + $0x1], 0 }
   0x5   :  { %16 = vsyncpa [#allocation9], 0 }
   0x6   :  { %18 = vsyncpa [#allocation9 + $0x1], 0  ;;  %s1427_s12 = smov 0   ;;  %s1429_s13 = smov 0  }
   0x7   :  { %s1431_s14 = smov 0   ;;  %s1433_s15 = smov 0  }
   0x8 LB: > { %s1448_s16 = sadd.s32 4294967295, %s1394_s15   ;;  %s1150_s17 = sadd.s32 4294967294, %s1394_s15   ;;  %s1394_s15 = sphi %s1433_s15, %s2012_s15   ;;  %s1390_s14 = sphi %s1431_s14, %s2011_s14   ;;  %s1386_s13 = sphi %s1429_s13, %s2010_s13   ;;  %s1382_s12 = sphi %s1427_s12, %s2009_s12  }
   0x9   : > { %p44_p0 = scmp.ne.s32.totalorder %s1386_s13, %s1382_s12  ;;  %p1992_p1 = scmp.eq.s32.totalorder %s1448_s16, 0 }
   0xa   : > { %p95_p3 = scmp.eq.s32.totalorder %s1150_s17, 3  ;;  %p1151_p5 = scmp.ge.s32.totalorder %s1394_s15, 1 }
   0xb   : > { %p1457_p4 = por %p1992_p1, %p44_p0  ;;  %p128_p7 = scmp.lt.s32.totalorder %s1394_s15, 5 }
   0xc   : > { %p1462_p6 = por %p95_p3, %p44_p0  ;;  %s1396_s21 = smov [#allocation5]  }
   0xd   : > { %s1996_s18 = scalar_select %p1457_p4, 1, 0 }
   0xe   : > { %s1997_s19 = scalar_select %p1462_p6, 1, 0 }
   0xf   : > { %p1467_p8 = pnand %p1151_p5, %p128_p7  ;;  %s140_s22 = sshll.u32 %s1396_s21, 4  ;;  %s141_s22 = int_to_ptr.vmem [resolvable:$true] %s140_s22 }
  0x10   : > { %s1480_s24 = sadd.s32 1, %s1394_s15   ;;  %s31_s25 = sadd.s32 1, %s1390_s14 }
  0x11   : > { %s1998_s20 = scalar_select %p1467_p8, 1, 0 }
  0x12   : > { %p1183_p9 = pneg %p1467_p8  ;;  %s28_s26 = ssub.s32 %s1394_s15, %s1480_s24 }
  0x13   : > { %s1253_s27 = scalar_lea.vmem %s141_s22, 8192  ;;  %p1261_p3 = scmp.lt.s32.totalorder %s141_s22, %s141_s22 }
  0x14   : > { %p1475_p10 = pnand %p1183_p9, %p1992_p1  ;;  %p1254_p12 = scmp.ne.s32.totalorder %s141_s22, %s1253_s27 }
  0x15   : > { %p1262_p5 = scmp.lt.s32.totalorder %s1253_s27, %s1253_s27 }
  0x16   : > { %p1244_p11 = pneg %p1475_p10 }
  0x17   : > { %p1263_p7 = por %p1262_p5, %p1261_p3 }
  0x18   : > { %p1256_p13 = pnand %p1254_p12, %p1244_p11 }
  0x1a   : > { %p1257_p0 = pneg %p1256_p13 }
  0x1c   : > { %p1264_p2 = pnand %p1263_p7, %p1257_p0 }
  0x1e   : > { %1267 = shalt.err (!%p1264_p2)
}
  0x1f   : > { %s1397_s28 = smov 128   ;;  %s1398_s29 = smov 8  }
  0x20   : > { %1186 = dma.hbm_to_vmem [thread:$0]  (!%p1475_p10), %s1989_s1, 8192, %s141_s22, [#allocation6], %s1397_s28, %s1397_s28, %s1398_s29  }
  0x21   : > { %p29_p9 = scmp.eq.s32.totalorder %s28_s26, 0  ;;  %p38_p11 = scmp.ne.s32.totalorder %s1390_s14, %s1386_s13 }
  0x22   : > { %p39_p12 = scmp.eq.s32.totalorder %s1394_s15, 0  ;;  %p1199_p2 = scmp.lt.s32.totalorder %s1394_s15, 4 }
  0x23   : > { %s1497_s5 = scalar_select %p29_p9, %s1390_s14, %s31_s25  }
  0x24   : > { %p40_p13 = por %p39_p12, %p38_p11  ;;  %p2000_p0 = scmp.eq.s32.totalorder %s1448_s16, 3 }
  0x25   : > { %s154_s7 = sand.u32 1, %s1390_s14   ;;  %s1171_s8 = sshll.u32 %s1394_s15, 14 }
  0x26   : > { %p1501_p3 = por %p2000_p0, %p38_p11  ;;  %s1154_s9 = sshll.u32 %s154_s7, 10 }
  0x27   : > { %s1510_s17 = scalar_lea.hbm %s1988_s0, %s1171_s8  ;;  %s158_s21 = scalar_lea.vmem [#allocation2], %s1154_s9 }
  0x28   : > { %s2001_s6 = scalar_select %p1501_p3, 1, 0 }
  0x29   : > { %s166_s22 = sshll.u32 %s158_s21, 4  ;;  %p1512_p10 = pnand %p1199_p2, %p40_p13  ;;  %s1516_s22 = int_to_ptr.vmem [resolvable:$true] %s166_s22 }
  0x2a   : > { %s1518_s25 = scalar_lea.sflag [#allocation3], %s154_s7  ;;  %s1268_s26 = scalar_lea.hbm %s1510_s17, 16384 }
  0x2b   : > { %p1269_p5 = scmp.ne.s32.totalorder %s1510_s17, %s1268_s26  ;;  %p1270_p7 = pneg %p1512_p10 }
  0x2c   : > { %s1273_s29 = scalar_lea.hbm %s1988_s0, 65536  ;;  %p1274_p12 = scmp.lt.s32.totalorder %s1510_s17, %s1988_s0 }
  0x2d   : > { %p1271_p9 = pnand %p1270_p7, %p1269_p5  ;;  %p1275_p2 = scmp.lt.s32.totalorder %s1273_s29, %s1268_s26 }
  0x2f   : > { %p1272_p11 = pneg %p1271_p9  ;;  %p1276_p13 = por %p1275_p2, %p1274_p12 }
  0x31   : > { %p1277_p0 = pnand %p1276_p13, %p1272_p11 }
  0x33   : > { %1280 = shalt.err (!%p1277_p0)
}
  0x34   : > { %s1281_s7 = scalar_lea.vmem %s1516_s22, 16384  ;;  %s1399_s8 = smov [#allocation2]  }
  0x35   : > { %p1282_p1 = scmp.ne.s32.totalorder %s1516_s22, %s1281_s7  ;;  %s1286_s9 = sshll.u32 %s1399_s8, 4  ;;  %s1287_s9 = int_to_ptr.vmem [resolvable:$false] %s1286_s9 }
  0x36   : > { %s1288_s10 = scalar_lea.vmem %s1287_s9, 32768  ;;  %p1289_p9 = scmp.lt.s32.totalorder %s1516_s22, %s1287_s9 }
  0x37   : > { %p1284_p6 = pnand %p1282_p1, %p1270_p7  ;;  %p1290_p3 = scmp.lt.s32.totalorder %s1288_s10, %s1281_s7 }
  0x39   : > { %p1285_p5 = pneg %p1284_p6  ;;  %p1291_p4 = por %p1290_p3, %p1289_p9 }
  0x3b   : > { %p1292_p8 = pnand %p1291_p4, %p1285_p5 }
  0x3d   : > { %1295 = shalt.err (!%p1292_p8)
}
  0x3e   : > { %s1400_s11 = smov 512   ;;  %s1401_s21 = smov 32  }
  0x3f   : > { %1190 = dma.hbm_to_vmem [thread:$0]  (!%p1512_p10), %s1510_s17, 16384, %s1516_s22, %s1518_s25, %s1400_s11, %s1400_s11, %s1401_s21  }
  0x40   : > { %p2003_p1 = scmp.ne.s32.totalorder %s1998_s20, 0 }
  0x41   : > { %s1542_s26 = sand.u32 (!%p2003_p1), 1, %s1386_s13   ;;  %p2004_p4 = scmp.ne.s32.totalorder (!%p2003_p1), %s1996_s18, 0 }
  0x42   : > { %178 = sbr.rel (%p2003_p1) target bundleno = 501 (0x1f5), region = 28  ;;  %s1159_s27 = sshll.u32 (!%p2003_p1), %s1542_s26, 10 }
  0x43   : > { %s181_s28 = scalar_lea.sflag (!%p2003_p1), [#allocation3], %s1542_s26  ;;  %s1546_s29 = scalar_lea.vmem (!%p2003_p1), [#allocation2], %s1159_s27 }
  0x47   : > { %1365 = dma.done.wait (%p2004_p4), %s181_s28, 16384  }
  0x48   : > { %1367 = vsyncadd (%p2004_p4), %s181_s28, 4294950912  ;;  %p2005_p6 = scmp.eq.s32.totalorder %s1448_s16, 0 }
  0x4a   : > { %1369 = dma.done.wait (%p2005_p6), [#allocation6], 8192   ;;  %p2006_p8 = pmov %p2005_p6 }
  0x4b   : > { %v1402_v0 = vmov 0.0   ;;  %v361_v1 = vld [vmem:[#allocation5 + $0x78] sm:$0xff]  ;;  %v360_v3 = vld [vmem:[#allocation5 + $0x70] sm:$0xff]  ;;  %v359_v5 = vld [vmem:[#allocation5 + $0x68] sm:$0xff]  ;;  %s1161_s18 = sshll.u32 %s1542_s26, 8  ;;  %s1172_s17 = sshll.u32 %s1448_s16, 12 }
  0x4c   : > { %1371 = vsyncadd (%p2006_p8), [#allocation6], 4294959104  ;;  %410 = vmatprep.subr.mxu0 %v1402_v0  ;;  %635 = vmatprep.subr.mxu1 %v1402_v0  ;;  %v393_v2 = vld [vmem:[#allocation5 + $0x178] sm:$0xff]  ;;  %v392_v4 = vld [vmem:[#allocation5 + $0x170] sm:$0xff]  ;;  %s1751_s20 = scalar_lea.vmem [#allocation7], %s1161_s18  ;;  %s1919_s30 = scalar_lea.hbm %s1990_s2, %s1172_s17 }
  0x4d   : > { %411 = vmatpush1.msra.mxu0 %v361_v1  ;;  %636 = vmatpush1.msra.mxu1 %v393_v2  ;;  %v391_v6 = vld [vmem:[#allocation5 + $0x168] sm:$0xff]  ;;  %v358_v7 = vld [vmem:[#allocation5 + $0x60] sm:$0xff]  ;;  %v357_v9 = vld [vmem:[#allocation5 + $0x58] sm:$0xff]  ;;  %s1022_s22 = sshll.u32 %s1751_s20, 4  ;;  %s1004_s4 = scalar_lea.sflag [#allocation4], %s1542_s26  ;;  %s1921_s22 = int_to_ptr.vmem [resolvable:$true] %s1022_s22 }
  0x4e   : > { %412 = vmatprep.subr.mxu0 %v1402_v0  ;;  %637 = vmatprep.subr.mxu1 %v1402_v0  ;;  %v390_v8 = vld [vmem:[#allocation5 + $0x160] sm:$0xff]  ;;  %v389_v10 = vld [vmem:[#allocation5 + $0x158] sm:$0xff]  ;;  %v356_v11 = vld [vmem:[#allocation5 + $0x50] sm:$0xff]  ;;  %s1296_s7 = scalar_lea.vmem %s1921_s22, 4096  ;;  %p2007_p10 = scmp.ne.s32.totalorder %s2001_s6, 0 }
  0x4f   : > { %413 = vmatpush1.msra.mxu0 %v360_v3  ;;  %638 = vmatpush1.msra.mxu1 %v392_v4  ;;  %v388_v12 = vld [vmem:[#allocation5 + $0x150] sm:$0xff]  ;;  %v355_v13 = vld [vmem:[#allocation5 + $0x48] sm:$0xff]  ;;  %v354_v15 = vld [vmem:[#allocation5 + $0x40] sm:$0xff]  ;;  %p1297_p3 = scmp.ne.s32.totalorder %s1921_s22, %s1296_s7  ;;  %s1403_s8 = smov [#allocation7]  }
  0x50   : > { %414 = vmatprep.subr.mxu0 %v1402_v0  ;;  %639 = vmatprep.subr.mxu1 %v1402_v0  ;;  %v387_v14 = vld [vmem:[#allocation5 + $0x148] sm:$0xff]  ;;  %v386_v16 = vld [vmem:[#allocation5 + $0x140] sm:$0xff]  ;;  %v353_v17 = vld [vmem:[#allocation5 + $0x38] sm:$0xff]  ;;  %s1300_s9 = sshll.u32 %s1403_s8, 4  ;;  %s1301_s9 = int_to_ptr.vmem [resolvable:$false] %s1300_s9 }
  0x51   : > { %415 = vmatpush1.msra.mxu0 %v359_v5  ;;  %640 = vmatpush1.msra.mxu1 %v391_v6  ;;  %v385_v18 = vld [vmem:[#allocation5 + $0x138] sm:$0xff]  ;;  %v352_v19 = vld [vmem:[#allocation5 + $0x30] sm:$0xff]  ;;  %v351_v21 = vld [vmem:[#allocation5 + $0x28] sm:$0xff]  ;;  %p1298_p7 = pnand %p1297_p3, %p2007_p10  ;;  %s1302_s10 = scalar_lea.vmem %s1301_s9, 8192 }
  0x52   : > { %416 = vmatprep.subr.mxu0 %v1402_v0  ;;  %641 = vmatprep.subr.mxu1 %v1402_v0  ;;  %v384_v20 = vld [vmem:[#allocation5 + $0x130] sm:$0xff]  ;;  %v383_v22 = vld [vmem:[#allocation5 + $0x128] sm:$0xff]  ;;  %v350_v23 = vld [vmem:[#allocation5 + $0x20] sm:$0xff]  ;;  %p1303_p12 = scmp.lt.s32.totalorder %s1921_s22, %s1301_s9  ;;  %p1304_p2 = scmp.lt.s32.totalorder %s1302_s10, %s1296_s7 }
  0x53   : > { %417 = vmatpush1.msra.mxu0 %v358_v7  ;;  %642 = vmatpush1.msra.mxu1 %v390_v8  ;;  %v382_v24 = vld [vmem:[#allocation5 + $0x120] sm:$0xff]  ;;  %v349_v25 = vld [vmem:[#allocation5 + $0x18] sm:$0xff]  ;;  %v348_v27 = vld [vmem:[#allocation5 + $0x10] sm:$0xff]  ;;  %p1299_p11 = pneg %p1298_p7 }
  0x54   : > { %418 = vmatprep.subr.mxu0 %v1402_v0  ;;  %643 = vmatprep.subr.mxu1 %v1402_v0  ;;  %v381_v26 = vld [vmem:[#allocation5 + $0x118] sm:$0xff]  ;;  %v380_v28 = vld [vmem:[#allocation5 + $0x110] sm:$0xff]  ;;  %v347_v29 = vld [vmem:[#allocation5 + $0x8] sm:$0xff]  ;;  %p1305_p13 = por %p1304_p2, %p1303_p12 }
  0x55   : > { %419 = vmatpush1.msra.mxu0 %v357_v9  ;;  %644 = vmatpush1.msra.mxu1 %v389_v10  ;;  %v379_v30 = vld [vmem:[#allocation5 + $0x108] sm:$0xff]  ;;  %v346_v31 = vld [vmem:[#allocation5] sm:$0xff]  ;;  %v377_v33 = vld [vmem:[#allocation5 + $0xf8] sm:$0xff] }
  0x56   : > { %420 = vmatprep.subr.mxu0 %v1402_v0  ;;  %645 = vmatprep.subr.mxu1 %v1402_v0  ;;  %v378_v32 = vld [vmem:[#allocation5 + $0x100] sm:$0xff]  ;;  %v409_v34 = vld [vmem:[#allocation5 + $0x1f8] sm:$0xff]  ;;  %v376_v35 = vld [vmem:[#allocation5 + $0xf0] sm:$0xff]  ;;  %p1306_p0 = pnand %p1305_p13, %p1299_p11 }
  0x57   : > { %421 = vmatpush1.msra.mxu0 %v356_v11  ;;  %646 = vmatpush1.msra.mxu1 %v388_v12  ;;  %v408_v36 = vld [vmem:[#allocation5 + $0x1f0] sm:$0xff]  ;;  %v375_v37 = vld [vmem:[#allocation5 + $0xe8] sm:$0xff]  ;;  %v374_v39 = vld [vmem:[#allocation5 + $0xe0] sm:$0xff] }
  0x58   : > { %422 = vmatprep.subr.mxu0 %v1402_v0  ;;  %647 = vmatprep.subr.mxu1 %v1402_v0  ;;  %v407_v38 = vld [vmem:[#allocation5 + $0x1e8] sm:$0xff]  ;;  %v406_v40 = vld [vmem:[#allocation5 + $0x1e0] sm:$0xff]  ;;  %v373_v41 = vld [vmem:[#allocation5 + $0xd8] sm:$0xff] }
  0x59   : > { %423 = vmatpush1.msra.mxu0 %v355_v13  ;;  %648 = vmatpush1.msra.mxu1 %v387_v14  ;;  %v405_v42 = vld [vmem:[#allocation5 + $0x1d8] sm:$0xff]  ;;  %v372_v43 = vld [vmem:[#allocation5 + $0xd0] sm:$0xff]  ;;  %v371_v45 = vld [vmem:[#allocation5 + $0xc8] sm:$0xff] }
  0x5a   : > { %424 = vmatprep.subr.mxu0 %v1402_v0  ;;  %649 = vmatprep.subr.mxu1 %v1402_v0  ;;  %v404_v44 = vld [vmem:[#allocation5 + $0x1d0] sm:$0xff]  ;;  %v403_v46 = vld [vmem:[#allocation5 + $0x1c8] sm:$0xff]  ;;  %v370_v47 = vld [vmem:[#allocation5 + $0xc0] sm:$0xff] }
  0x5b   : > { %425 = vmatpush1.msra.mxu0 %v354_v15  ;;  %650 = vmatpush1.msra.mxu1 %v386_v16  ;;  %v402_v48 = vld [vmem:[#allocation5 + $0x1c0] sm:$0xff]  ;;  %v369_v49 = vld [vmem:[#allocation5 + $0xb8] sm:$0xff]  ;;  %v368_v51 = vld [vmem:[#allocation5 + $0xb0] sm:$0xff] }
  0x5c   : > { %426 = vmatprep.subr.mxu0 %v1402_v0  ;;  %651 = vmatprep.subr.mxu1 %v1402_v0  ;;  %v401_v50 = vld [vmem:[#allocation5 + $0x1b8] sm:$0xff]  ;;  %v400_v52 = vld [vmem:[#allocation5 + $0x1b0] sm:$0xff]  ;;  %v367_v53 = vld [vmem:[#allocation5 + $0xa8] sm:$0xff] }
  0x5d   : > { %427 = vmatpush1.msra.mxu0 %v353_v17  ;;  %652 = vmatpush1.msra.mxu1 %v385_v18  ;;  %v399_v54 = vld [vmem:[#allocation5 + $0x1a8] sm:$0xff]  ;;  %v366_v55 = vld [vmem:[#allocation5 + $0xa0] sm:$0xff]  ;;  %v365_v57 = vld [vmem:[#allocation5 + $0x98] sm:$0xff] }
  0x5e   : > { %428 = vmatprep.subr.mxu0 %v1402_v0  ;;  %653 = vmatprep.subr.mxu1 %v1402_v0  ;;  %v398_v56 = vld [vmem:[#allocation5 + $0x1a0] sm:$0xff]  ;;  %v397_v58 = vld [vmem:[#allocation5 + $0x198] sm:$0xff]  ;;  %v364_v59 = vld [vmem:[#allocation5 + $0x90] sm:$0xff] }
  0x5f   : > { %429 = vmatpush1.msra.mxu0 %v352_v19  ;;  %654 = vmatpush1.msra.mxu1 %v384_v20  ;;  %v396_v60 = vld [vmem:[#allocation5 + $0x190] sm:$0xff]  ;;  %v363_v61 = vld [vmem:[#allocation5 + $0x88] sm:$0xff]  ;;  %v362_v63 = vld [vmem:[#allocation5 + $0x80] sm:$0xff] }
  0x60   : > { %430 = vmatprep.subr.mxu0 %v1402_v0  ;;  %655 = vmatprep.subr.mxu1 %v1402_v0  ;;  %v395_v62 = vld [vmem:[#allocation5 + $0x188] sm:$0xff]  ;;  %v394_v2 = vld [vmem:[#allocation5 + $0x180] sm:$0xff]  ;;  %v221_v3 = vld [vmem:[%s1546_s29 + $0x18] sm:$0xff] }
  0x61   : > { %431 = vmatpush1.msra.mxu0 %v351_v21  ;;  %656 = vmatpush1.msra.mxu1 %v383_v22  ;;  %v219_v1 = vld [vmem:[%s1546_s29 + $0x8] sm:$0xff]  ;;  %v218_v4 = vld [vmem:[%s1546_s29] sm:$0xff]  ;;  %v220_v5 = vld [vmem:[%s1546_s29 + $0x10] sm:$0xff] }
  0x62   : > { %432 = vmatprep.subr.mxu0 %v1402_v0  ;;  %657 = vmatprep.subr.mxu1 %v1402_v0  ;;  %v223_v6 = vld [vmem:[%s1546_s29 + $0x28] sm:$0xff]  ;;  %v225_v7 = vld [vmem:[%s1546_s29 + $0x38] sm:$0xff]  ;;  %v222_v8 = vld [vmem:[%s1546_s29 + $0x20] sm:$0xff] }
  0x63   : > { %433 = vmatpush1.msra.mxu0 %v350_v23  ;;  %658 = vmatpush1.msra.mxu1 %v382_v24  ;;  %v227_v9 = vld [vmem:[%s1546_s29 + $0x48] sm:$0xff]  ;;  %v229_v10 = vld [vmem:[%s1546_s29 + $0x58] sm:$0xff]  ;;  %v226_v11 = vld [vmem:[%s1546_s29 + $0x40] sm:$0xff] }
  0x64   : > { %434 = vmatprep.subr.mxu0 %v1402_v0  ;;  %659 = vmatprep.subr.mxu1 %v1402_v0  ;;  %v228_v12 = vld [vmem:[%s1546_s29 + $0x50] sm:$0xff]  ;;  %v231_v13 = vld [vmem:[%s1546_s29 + $0x68] sm:$0xff]  ;;  %v233_v14 = vld [vmem:[%s1546_s29 + $0x78] sm:$0xff] }
  0x65   : > { %435 = vmatpush1.msra.mxu0 %v349_v25  ;;  %660 = vmatpush1.msra.mxu1 %v381_v26  ;;  %v230_v15 = vld [vmem:[%s1546_s29 + $0x60] sm:$0xff]  ;;  %v232_v16 = vld [vmem:[%s1546_s29 + $0x70] sm:$0xff]  ;;  %v235_v17 = vld [vmem:[%s1546_s29 + $0x88] sm:$0xff] }
  0x66   : > { %436 = vmatprep.subr.mxu0 %v1402_v0  ;;  %661 = vmatprep.subr.mxu1 %v1402_v0  ;;  %v237_v18 = vld [vmem:[%s1546_s29 + $0x98] sm:$0xff]  ;;  %v234_v19 = vld [vmem:[%s1546_s29 + $0x80] sm:$0xff]  ;;  %v236_v20 = vld [vmem:[%s1546_s29 + $0x90] sm:$0xff] }
  0x67   : > { %437 = vmatpush1.msra.mxu0 %v348_v27  ;;  %662 = vmatpush1.msra.mxu1 %v380_v28  ;;  %v239_v21 = vld [vmem:[%s1546_s29 + $0xa8] sm:$0xff]  ;;  %v241_v22 = vld [vmem:[%s1546_s29 + $0xb8] sm:$0xff]  ;;  %v238_v23 = vld [vmem:[%s1546_s29 + $0xa0] sm:$0xff] }
  0x68   : > { %438 = vmatprep.subr.mxu0 %v1402_v0  ;;  %663 = vmatprep.subr.mxu1 %v1402_v0  ;;  %v240_v24 = vld [vmem:[%s1546_s29 + $0xb0] sm:$0xff]  ;;  %v243_v25 = vld [vmem:[%s1546_s29 + $0xc8] sm:$0xff]  ;;  %v245_v26 = vld [vmem:[%s1546_s29 + $0xd8] sm:$0xff] }
  0x69   : > { %439 = vmatpush1.msra.mxu0 %v347_v29  ;;  %664 = vmatpush1.msra.mxu1 %v379_v30  ;;  %v242_v27 = vld [vmem:[%s1546_s29 + $0xc0] sm:$0xff]  ;;  %v244_v28 = vld [vmem:[%s1546_s29 + $0xd0] sm:$0xff]  ;;  %v247_v29 = vld [vmem:[%s1546_s29 + $0xe8] sm:$0xff] }
  0x6a   : > { %440 = vmatprep.subr.mxu0 %v1402_v0  ;;  %665 = vmatprep.subr.mxu1 %v1402_v0  ;;  %v249_v30 = vld [vmem:[%s1546_s29 + $0xf8] sm:$0xff] }
  0x6b   : > { %441 = vmatpush1.msra.mxu0 %v346_v31  ;;  %666 = vmatpush1.msra.mxu1 %v378_v32  ;;  %v246_v31 = vld [vmem:[%s1546_s29 + $0xe0] sm:$0xff]  ;;  %v248_v32 = vld [vmem:[%s1546_s29 + $0xf0] sm:$0xff] }
  0x6c   : > { %442 = vmatprep.subr.mxu0 %v1402_v0  ;;  %667 = vmatprep.subr.mxu1 %v1402_v0 }
  0x6d   : > { %443 = vmatpush2.msra.mxu0 %v377_v33  ;;  %668 = vmatpush2.msra.mxu1 %v409_v34  ;;  %v251_v33 = vld [vmem:[%s1546_s29 + $0x108] sm:$0xff]  ;;  %v253_v34 = vld [vmem:[%s1546_s29 + $0x118] sm:$0xff] }
  0x6e   : > { %444 = vmatprep.subr.mxu0 %v1402_v0  ;;  %669 = vmatprep.subr.mxu1 %v1402_v0 }
  0x6f   : > { %445 = vmatpush2.msra.mxu0 %v376_v35  ;;  %670 = vmatpush2.msra.mxu1 %v408_v36  ;;  %v250_v35 = vld [vmem:[%s1546_s29 + $0x100] sm:$0xff]  ;;  %v252_v36 = vld [vmem:[%s1546_s29 + $0x110] sm:$0xff] }
  0x70   : > { %446 = vmatprep.subr.mxu0 %v1402_v0  ;;  %671 = vmatprep.subr.mxu1 %v1402_v0 }
  0x71   : > { %447 = vmatpush2.msra.mxu0 %v375_v37  ;;  %672 = vmatpush2.msra.mxu1 %v407_v38  ;;  %v255_v37 = vld [vmem:[%s1546_s29 + $0x128] sm:$0xff]  ;;  %v257_v38 = vld [vmem:[%s1546_s29 + $0x138] sm:$0xff] }
  0x72   : > { %448 = vmatprep.subr.mxu0 %v1402_v0  ;;  %673 = vmatprep.subr.mxu1 %v1402_v0 }
  0x73   : > { %449 = vmatpush2.msra.mxu0 %v374_v39  ;;  %674 = vmatpush2.msra.mxu1 %v406_v40  ;;  %v254_v39 = vld [vmem:[%s1546_s29 + $0x120] sm:$0xff]  ;;  %v256_v40 = vld [vmem:[%s1546_s29 + $0x130] sm:$0xff] }
  0x74   : > { %450 = vmatprep.subr.mxu0 %v1402_v0  ;;  %675 = vmatprep.subr.mxu1 %v1402_v0 }
  0x75   : > { %451 = vmatpush2.msra.mxu0 %v373_v41  ;;  %676 = vmatpush2.msra.mxu1 %v405_v42  ;;  %v259_v41 = vld [vmem:[%s1546_s29 + $0x148] sm:$0xff]  ;;  %v261_v42 = vld [vmem:[%s1546_s29 + $0x158] sm:$0xff] }
  0x76   : > { %452 = vmatprep.subr.mxu0 %v1402_v0  ;;  %677 = vmatprep.subr.mxu1 %v1402_v0 }
  0x77   : > { %453 = vmatpush2.msra.mxu0 %v372_v43  ;;  %678 = vmatpush2.msra.mxu1 %v404_v44  ;;  %v258_v43 = vld [vmem:[%s1546_s29 + $0x140] sm:$0xff]  ;;  %v260_v44 = vld [vmem:[%s1546_s29 + $0x150] sm:$0xff] }
  0x78   : > { %454 = vmatprep.subr.mxu0 %v1402_v0  ;;  %679 = vmatprep.subr.mxu1 %v1402_v0 }
  0x79   : > { %455 = vmatpush2.msra.mxu0 %v371_v45  ;;  %680 = vmatpush2.msra.mxu1 %v403_v46  ;;  %v263_v45 = vld [vmem:[%s1546_s29 + $0x168] sm:$0xff]  ;;  %v265_v46 = vld [vmem:[%s1546_s29 + $0x178] sm:$0xff] }
  0x7a   : > { %456 = vmatprep.subr.mxu0 %v1402_v0  ;;  %681 = vmatprep.subr.mxu1 %v1402_v0 }
  0x7b   : > { %457 = vmatpush2.msra.mxu0 %v370_v47  ;;  %682 = vmatpush2.msra.mxu1 %v402_v48  ;;  %v262_v47 = vld [vmem:[%s1546_s29 + $0x160] sm:$0xff]  ;;  %v264_v48 = vld [vmem:[%s1546_s29 + $0x170] sm:$0xff] }
  0x7c   : > { %458 = vmatprep.subr.mxu0 %v1402_v0  ;;  %683 = vmatprep.subr.mxu1 %v1402_v0 }
  0x7d   : > { %459 = vmatpush2.msra.mxu0 %v369_v49  ;;  %684 = vmatpush2.msra.mxu1 %v401_v50  ;;  %v267_v49 = vld [vmem:[%s1546_s29 + $0x188] sm:$0xff]  ;;  %v269_v50 = vld [vmem:[%s1546_s29 + $0x198] sm:$0xff] }
  0x7e   : > { %460 = vmatprep.subr.mxu0 %v1402_v0  ;;  %685 = vmatprep.subr.mxu1 %v1402_v0 }
  0x7f   : > { %461 = vmatpush2.msra.mxu0 %v368_v51  ;;  %686 = vmatpush2.msra.mxu1 %v400_v52  ;;  %v266_v51 = vld [vmem:[%s1546_s29 + $0x180] sm:$0xff]  ;;  %v268_v52 = vld [vmem:[%s1546_s29 + $0x190] sm:$0xff] }
  0x80   : > { %462 = vmatprep.subr.mxu0 %v1402_v0  ;;  %687 = vmatprep.subr.mxu1 %v1402_v0 }
  0x81   : > { %463 = vmatpush2.msra.mxu0 %v367_v53  ;;  %688 = vmatpush2.msra.mxu1 %v399_v54  ;;  %v271_v53 = vld [vmem:[%s1546_s29 + $0x1a8] sm:$0xff]  ;;  %v273_v54 = vld [vmem:[%s1546_s29 + $0x1b8] sm:$0xff] }
  0x82   : > { %464 = vmatprep.subr.mxu0 %v1402_v0  ;;  %689 = vmatprep.subr.mxu1 %v1402_v0 }
  0x83   : > { %465 = vmatpush2.msra.mxu0 %v366_v55  ;;  %690 = vmatpush2.msra.mxu1 %v398_v56  ;;  %v270_v55 = vld [vmem:[%s1546_s29 + $0x1a0] sm:$0xff]  ;;  %v272_v56 = vld [vmem:[%s1546_s29 + $0x1b0] sm:$0xff] }
  0x84   : > { %466 = vmatprep.subr.mxu0 %v1402_v0  ;;  %691 = vmatprep.subr.mxu1 %v1402_v0 }
  0x85   : > { %467 = vmatpush2.msra.mxu0 %v365_v57  ;;  %692 = vmatpush2.msra.mxu1 %v397_v58  ;;  %v275_v57 = vld [vmem:[%s1546_s29 + $0x1c8] sm:$0xff]  ;;  %v277_v58 = vld [vmem:[%s1546_s29 + $0x1d8] sm:$0xff] }
  0x86   : > { %468 = vmatprep.subr.mxu0 %v1402_v0  ;;  %693 = vmatprep.subr.mxu1 %v1402_v0 }
  0x87   : > { %469 = vmatpush2.msra.mxu0 %v364_v59  ;;  %694 = vmatpush2.msra.mxu1 %v396_v60  ;;  %v274_v59 = vld [vmem:[%s1546_s29 + $0x1c0] sm:$0xff]  ;;  %v276_v60 = vld [vmem:[%s1546_s29 + $0x1d0] sm:$0xff] }
  0x88   : > { %470 = vmatprep.subr.mxu0 %v1402_v0  ;;  %695 = vmatprep.subr.mxu1 %v1402_v0 }
  0x89   : > { %471 = vmatpush2.msra.mxu0 %v363_v61  ;;  %696 = vmatpush2.msra.mxu1 %v395_v62  ;;  %v279_v61 = vld [vmem:[%s1546_s29 + $0x1e8] sm:$0xff]  ;;  %v281_v62 = vld [vmem:[%s1546_s29 + $0x1f8] sm:$0xff] }
  0x8a   : > { %472 = vmatprep.subr.mxu0 %v1402_v0  ;;  %697 = vmatprep.subr.mxu1 %v1402_v0  ;;  %v224_v0 = vld [vmem:[%s1546_s29 + $0x30] sm:$0xff] }
  0x8b   : > { %473 = vmatpush2.msra.mxu0 %v362_v63  ;;  %474 = vmatprep.mubr.f32.mxu0 %v219_v1  ;;  %v278_v63 = vld [vmem:[%s1546_s29 + $0x1e0] sm:$0xff]  ;;  %v280_v1 = vld [vmem:[%s1546_s29 + $0x1f0] sm:$0xff] }
  0x8c   : > { %698 = vmatpush2.msra.mxu1 %v394_v2  ;;  %699 = vmatprep.mubr.f32.mxu1 %v221_v3  ;;  %v283_v2 = vld [vmem:[%s1546_s29 + $0x208] sm:$0xff]  ;;  %v285_v3 = vld [vmem:[%s1546_s29 + $0x218] sm:$0xff] }
  0x8d   : > { %475 = vmatmul.mubr.f32.vlgmr.msra.gmra.mxu0 %v218_v4  ;;  %700 = vmatmul.mubr.f32.vlgmr.msra.gmra.mxu1 %v220_v5  ;;  %v282_v4 = vld [vmem:[%s1546_s29 + $0x200] sm:$0xff]  ;;  %v284_v5 = vld [vmem:[%s1546_s29 + $0x210] sm:$0xff] }
  0x8e   : > { %479 = vmatprep.mubr.f32.mxu0 %v223_v6  ;;  %704 = vmatprep.mubr.f32.mxu1 %v225_v7  ;;  %v287_v6 = vld [vmem:[%s1546_s29 + $0x228] sm:$0xff]  ;;  %v289_v7 = vld [vmem:[%s1546_s29 + $0x238] sm:$0xff] }
  0x91   : > { %480 = vmatmul.mubr.f32.gmra.mxu0 %v222_v8  ;;  %705 = vmatmul.mubr.f32.gmra.mxu1 %v224_v0  ;;  %v286_v8 = vld [vmem:[%s1546_s29 + $0x220] sm:$0xff]  ;;  %v288_v0 = vld [vmem:[%s1546_s29 + $0x230] sm:$0xff] }
  0x92   : > { %484 = vmatprep.mubr.f32.mxu0 %v227_v9  ;;  %709 = vmatprep.mubr.f32.mxu1 %v229_v10  ;;  %v291_v9 = vld [vmem:[%s1546_s29 + $0x248] sm:$0xff]  ;;  %v293_v10 = vld [vmem:[%s1546_s29 + $0x258] sm:$0xff] }
  0x95   : > { %485 = vmatmul.mubr.f32.gmra.mxu0 %v226_v11  ;;  %710 = vmatmul.mubr.f32.gmra.mxu1 %v228_v12  ;;  %v290_v11 = vld [vmem:[%s1546_s29 + $0x240] sm:$0xff]  ;;  %v292_v12 = vld [vmem:[%s1546_s29 + $0x250] sm:$0xff] }
  0x96   : > { %489 = vmatprep.mubr.f32.mxu0 %v231_v13  ;;  %714 = vmatprep.mubr.f32.mxu1 %v233_v14  ;;  %v295_v13 = vld [vmem:[%s1546_s29 + $0x268] sm:$0xff]  ;;  %v297_v14 = vld [vmem:[%s1546_s29 + $0x278] sm:$0xff] }
  0x99   : > { %490 = vmatmul.mubr.f32.gmra.mxu0 %v230_v15  ;;  %715 = vmatmul.mubr.f32.gmra.mxu1 %v232_v16  ;;  %v294_v15 = vld [vmem:[%s1546_s29 + $0x260] sm:$0xff]  ;;  %v296_v16 = vld [vmem:[%s1546_s29 + $0x270] sm:$0xff] }
  0x9a   : > { %494 = vmatprep.mubr.f32.mxu0 %v235_v17  ;;  %719 = vmatprep.mubr.f32.mxu1 %v237_v18  ;;  %v299_v17 = vld [vmem:[%s1546_s29 + $0x288] sm:$0xff]  ;;  %v301_v18 = vld [vmem:[%s1546_s29 + $0x298] sm:$0xff] }
  0x9d   : > { %495 = vmatmul.mubr.f32.gmra.mxu0 %v234_v19  ;;  %720 = vmatmul.mubr.f32.gmra.mxu1 %v236_v20  ;;  %v298_v19 = vld [vmem:[%s1546_s29 + $0x280] sm:$0xff]  ;;  %v300_v20 = vld [vmem:[%s1546_s29 + $0x290] sm:$0xff] }
  0x9e   : > { %499 = vmatprep.mubr.f32.mxu0 %v239_v21  ;;  %724 = vmatprep.mubr.f32.mxu1 %v241_v22  ;;  %v303_v21 = vld [vmem:[%s1546_s29 + $0x2a8] sm:$0xff]  ;;  %v305_v22 = vld [vmem:[%s1546_s29 + $0x2b8] sm:$0xff] }
  0xa1   : > { %500 = vmatmul.mubr.f32.gmra.mxu0 %v238_v23  ;;  %725 = vmatmul.mubr.f32.gmra.mxu1 %v240_v24  ;;  %v302_v23 = vld [vmem:[%s1546_s29 + $0x2a0] sm:$0xff]  ;;  %v304_v24 = vld [vmem:[%s1546_s29 + $0x2b0] sm:$0xff] }
  0xa2   : > { %504 = vmatprep.mubr.f32.mxu0 %v243_v25  ;;  %729 = vmatprep.mubr.f32.mxu1 %v245_v26  ;;  %v307_v25 = vld [vmem:[%s1546_s29 + $0x2c8] sm:$0xff]  ;;  %v309_v26 = vld [vmem:[%s1546_s29 + $0x2d8] sm:$0xff] }
  0xa5   : > { %505 = vmatmul.mubr.f32.gmra.mxu0 %v242_v27  ;;  %730 = vmatmul.mubr.f32.gmra.mxu1 %v244_v28  ;;  %v306_v27 = vld [vmem:[%s1546_s29 + $0x2c0] sm:$0xff]  ;;  %v308_v28 = vld [vmem:[%s1546_s29 + $0x2d0] sm:$0xff] }
  0xa6   : > { %509 = vmatprep.mubr.f32.mxu0 %v247_v29  ;;  %734 = vmatprep.mubr.f32.mxu1 %v249_v30  ;;  %v311_v29 = vld [vmem:[%s1546_s29 + $0x2e8] sm:$0xff]  ;;  %v313_v30 = vld [vmem:[%s1546_s29 + $0x2f8] sm:$0xff] }
  0xa9   : > { %510 = vmatmul.mubr.f32.gmra.mxu0 %v246_v31  ;;  %735 = vmatmul.mubr.f32.gmra.mxu1 %v248_v32  ;;  %v310_v31 = vld [vmem:[%s1546_s29 + $0x2e0] sm:$0xff]  ;;  %v312_v32 = vld [vmem:[%s1546_s29 + $0x2f0] sm:$0xff] }
  0xaa   : > { %514 = vmatprep.mubr.f32.mxu0 %v251_v33  ;;  %739 = vmatprep.mubr.f32.mxu1 %v253_v34  ;;  %v315_v33 = vld [vmem:[%s1546_s29 + $0x308] sm:$0xff]  ;;  %v317_v34 = vld [vmem:[%s1546_s29 + $0x318] sm:$0xff] }
  0xad   : > { %515 = vmatmul.mubr.f32.gmra.mxu0 %v250_v35  ;;  %740 = vmatmul.mubr.f32.gmra.mxu1 %v252_v36  ;;  %v314_v35 = vld [vmem:[%s1546_s29 + $0x300] sm:$0xff]  ;;  %v316_v36 = vld [vmem:[%s1546_s29 + $0x310] sm:$0xff] }
  0xae   : > { %519 = vmatprep.mubr.f32.mxu0 %v255_v37  ;;  %744 = vmatprep.mubr.f32.mxu1 %v257_v38  ;;  %v319_v37 = vld [vmem:[%s1546_s29 + $0x328] sm:$0xff]  ;;  %v321_v38 = vld [vmem:[%s1546_s29 + $0x338] sm:$0xff] }
  0xb1   : > { %520 = vmatmul.mubr.f32.gmra.mxu0 %v254_v39  ;;  %745 = vmatmul.mubr.f32.gmra.mxu1 %v256_v40  ;;  %v318_v39 = vld [vmem:[%s1546_s29 + $0x320] sm:$0xff]  ;;  %v320_v40 = vld [vmem:[%s1546_s29 + $0x330] sm:$0xff] }
  0xb2   : > { %524 = vmatprep.mubr.f32.mxu0 %v259_v41  ;;  %749 = vmatprep.mubr.f32.mxu1 %v261_v42  ;;  %v323_v41 = vld [vmem:[%s1546_s29 + $0x348] sm:$0xff]  ;;  %v325_v42 = vld [vmem:[%s1546_s29 + $0x358] sm:$0xff] }
  0xb5   : > { %525 = vmatmul.mubr.f32.gmra.mxu0 %v258_v43  ;;  %750 = vmatmul.mubr.f32.gmra.mxu1 %v260_v44  ;;  %v322_v43 = vld [vmem:[%s1546_s29 + $0x340] sm:$0xff]  ;;  %v324_v44 = vld [vmem:[%s1546_s29 + $0x350] sm:$0xff] }
  0xb6   : > { %529 = vmatprep.mubr.f32.mxu0 %v263_v45  ;;  %754 = vmatprep.mubr.f32.mxu1 %v265_v46  ;;  %v327_v45 = vld [vmem:[%s1546_s29 + $0x368] sm:$0xff]  ;;  %v329_v46 = vld [vmem:[%s1546_s29 + $0x378] sm:$0xff] }
  0xb9   : > { %530 = vmatmul.mubr.f32.gmra.mxu0 %v262_v47  ;;  %755 = vmatmul.mubr.f32.gmra.mxu1 %v264_v48  ;;  %v326_v47 = vld [vmem:[%s1546_s29 + $0x360] sm:$0xff]  ;;  %v328_v48 = vld [vmem:[%s1546_s29 + $0x370] sm:$0xff] }
  0xba   : > { %534 = vmatprep.mubr.f32.mxu0 %v267_v49  ;;  %759 = vmatprep.mubr.f32.mxu1 %v269_v50  ;;  %v331_v49 = vld [vmem:[%s1546_s29 + $0x388] sm:$0xff]  ;;  %v333_v50 = vld [vmem:[%s1546_s29 + $0x398] sm:$0xff] }
  0xbd   : > { %535 = vmatmul.mubr.f32.gmra.mxu0 %v266_v51  ;;  %760 = vmatmul.mubr.f32.gmra.mxu1 %v268_v52  ;;  %v330_v51 = vld [vmem:[%s1546_s29 + $0x380] sm:$0xff]  ;;  %v332_v52 = vld [vmem:[%s1546_s29 + $0x390] sm:$0xff] }
  0xbe   : > { %539 = vmatprep.mubr.f32.mxu0 %v271_v53  ;;  %764 = vmatprep.mubr.f32.mxu1 %v273_v54  ;;  %v335_v53 = vld [vmem:[%s1546_s29 + $0x3a8] sm:$0xff]  ;;  %v337_v54 = vld [vmem:[%s1546_s29 + $0x3b8] sm:$0xff] }
  0xc1   : > { %540 = vmatmul.mubr.f32.gmra.mxu0 %v270_v55  ;;  %765 = vmatmul.mubr.f32.gmra.mxu1 %v272_v56  ;;  %v334_v55 = vld [vmem:[%s1546_s29 + $0x3a0] sm:$0xff]  ;;  %v336_v56 = vld [vmem:[%s1546_s29 + $0x3b0] sm:$0xff] }
  0xc2   : > { %544 = vmatprep.mubr.f32.mxu0 %v275_v57  ;;  %769 = vmatprep.mubr.f32.mxu1 %v277_v58  ;;  %v339_v57 = vld [vmem:[%s1546_s29 + $0x3c8] sm:$0xff]  ;;  %v341_v58 = vld [vmem:[%s1546_s29 + $0x3d8] sm:$0xff] }
  0xc5   : > { %545 = vmatmul.mubr.f32.gmra.mxu0 %v274_v59  ;;  %770 = vmatmul.mubr.f32.gmra.mxu1 %v276_v60  ;;  %v338_v59 = vld [vmem:[%s1546_s29 + $0x3c0] sm:$0xff]  ;;  %v340_v60 = vld [vmem:[%s1546_s29 + $0x3d0] sm:$0xff] }
  0xc6   : > { %549 = vmatprep.mubr.f32.mxu0 %v279_v61  ;;  %774 = vmatprep.mubr.f32.mxu1 %v281_v62  ;;  %v343_v61 = vld [vmem:[%s1546_s29 + $0x3e8] sm:$0xff]  ;;  %v345_v62 = vld [vmem:[%s1546_s29 + $0x3f8] sm:$0xff] }
  0xc9   : > { %550 = vmatmul.mubr.f32.gmra.mxu0 %v278_v63  ;;  %775 = vmatmul.mubr.f32.gmra.mxu1 %v280_v1  ;;  %v342_v63 = vld [vmem:[%s1546_s29 + $0x3e0] sm:$0xff]  ;;  %v344_v1 = vld [vmem:[%s1546_s29 + $0x3f0] sm:$0xff] }
  0xca   : > { %554 = vmatprep.mubr.f32.mxu0 %v283_v2  ;;  %779 = vmatprep.mubr.f32.mxu1 %v285_v3 }
  0xcd   : > { %555 = vmatmul.mubr.f32.gmra.mxu0 %v282_v4  ;;  %780 = vmatmul.mubr.f32.gmra.mxu1 %v284_v5 }
  0xce   : > { %559 = vmatprep.mubr.f32.mxu0 %v287_v6  ;;  %784 = vmatprep.mubr.f32.mxu1 %v289_v7 }
  0xd1   : > { %560 = vmatmul.mubr.f32.gmra.mxu0 %v286_v8  ;;  %785 = vmatmul.mubr.f32.gmra.mxu1 %v288_v0 }
  0xd2   : > { %564 = vmatprep.mubr.f32.mxu0 %v291_v9  ;;  %789 = vmatprep.mubr.f32.mxu1 %v293_v10 }
  0xd5   : > { %565 = vmatmul.mubr.f32.gmra.mxu0 %v290_v11  ;;  %790 = vmatmul.mubr.f32.gmra.mxu1 %v292_v12 }
  0xd6   : > { %569 = vmatprep.mubr.f32.mxu0 %v295_v13  ;;  %794 = vmatprep.mubr.f32.mxu1 %v297_v14 }
  0xd9   : > { %570 = vmatmul.mubr.f32.gmra.mxu0 %v294_v15  ;;  %795 = vmatmul.mubr.f32.gmra.mxu1 %v296_v16 }
  0xda   : > { %574 = vmatprep.mubr.f32.mxu0 %v299_v17  ;;  %799 = vmatprep.mubr.f32.mxu1 %v301_v18 }
  0xdd   : > { %575 = vmatmul.mubr.f32.gmra.mxu0 %v298_v19  ;;  %800 = vmatmul.mubr.f32.gmra.mxu1 %v300_v20 }
  0xde   : > { %579 = vmatprep.mubr.f32.mxu0 %v303_v21  ;;  %804 = vmatprep.mubr.f32.mxu1 %v305_v22 }
  0xe1   : > { %580 = vmatmul.mubr.f32.gmra.mxu0 %v302_v23  ;;  %805 = vmatmul.mubr.f32.gmra.mxu1 %v304_v24 }
  0xe2   : > { %584 = vmatprep.mubr.f32.mxu0 %v307_v25  ;;  %809 = vmatprep.mubr.f32.mxu1 %v309_v26 }
  0xe5   : > { %585 = vmatmul.mubr.f32.gmra.mxu0 %v306_v27  ;;  %810 = vmatmul.mubr.f32.gmra.mxu1 %v308_v28 }
  0xe6   : > { %589 = vmatprep.mubr.f32.mxu0 %v311_v29  ;;  %814 = vmatprep.mubr.f32.mxu1 %v313_v30 }
  0xe9   : > { %590 = vmatmul.mubr.f32.gmra.mxu0 %v310_v31  ;;  %815 = vmatmul.mubr.f32.gmra.mxu1 %v312_v32 }
  0xea   : > { %594 = vmatprep.mubr.f32.mxu0 %v315_v33  ;;  %819 = vmatprep.mubr.f32.mxu1 %v317_v34 }
  0xed   : > { %595 = vmatmul.mubr.f32.gmra.mxu0 %v314_v35  ;;  %820 = vmatmul.mubr.f32.gmra.mxu1 %v316_v36 }
  0xee   : > { %599 = vmatprep.mubr.f32.mxu0 %v319_v37  ;;  %824 = vmatprep.mubr.f32.mxu1 %v321_v38 }
  0xf1   : > { %600 = vmatmul.mubr.f32.gmra.mxu0 %v318_v39  ;;  %825 = vmatmul.mubr.f32.gmra.mxu1 %v320_v40 }
  0xf2   : > { %604 = vmatprep.mubr.f32.mxu0 %v323_v41  ;;  %829 = vmatprep.mubr.f32.mxu1 %v325_v42 }
  0xf5   : > { %605 = vmatmul.mubr.f32.gmra.mxu0 %v322_v43  ;;  %830 = vmatmul.mubr.f32.gmra.mxu1 %v324_v44 }
  0xf6   : > { %609 = vmatprep.mubr.f32.mxu0 %v327_v45  ;;  %834 = vmatprep.mubr.f32.mxu1 %v329_v46 }
  0xf9   : > { %610 = vmatmul.mubr.f32.gmra.mxu0 %v326_v47  ;;  %835 = vmatmul.mubr.f32.gmra.mxu1 %v328_v48 }
  0xfa   : > { %614 = vmatprep.mubr.f32.mxu0 %v331_v49  ;;  %839 = vmatprep.mubr.f32.mxu1 %v333_v50 }
  0xfd   : > { %615 = vmatmul.mubr.f32.gmra.mxu0 %v330_v51  ;;  %840 = vmatmul.mubr.f32.gmra.mxu1 %v332_v52 }
  0xfe   : > { %619 = vmatprep.mubr.f32.mxu0 %v335_v53  ;;  %844 = vmatprep.mubr.f32.mxu1 %v337_v54 }
 0x101   : > { %620 = vmatmul.mubr.f32.gmra.mxu0 %v334_v55  ;;  %845 = vmatmul.mubr.f32.gmra.mxu1 %v336_v56 }
 0x102   : > { %624 = vmatprep.mubr.f32.mxu0 %v339_v57  ;;  %849 = vmatprep.mubr.f32.mxu1 %v341_v58 }
 0x105   : > { %625 = vmatmul.mubr.f32.gmra.mxu0 %v338_v59  ;;  %850 = vmatmul.mubr.f32.gmra.mxu1 %v340_v60 }
 0x106   : > { %629 = vmatprep.mubr.f32.mxu0 %v343_v61  ;;  %854 = vmatprep.mubr.f32.mxu1 %v345_v62 }
 0x109   : > { %630 = vmatmul.mubr.f32.gmra.mxu0 %v342_v63  ;;  %855 = vmatmul.mubr.f32.gmra.mxu1 %v344_v1 }
 0x14d   : > { %v476_v2 = vpop.f32.mrf.mxu0  ;;  %v701_v3 = vpop.f32.mrf.mxu1 }
 0x14e   : > { %v1749_v4 = vadd.f32 %v701_v3, %v476_v2 }
 0x14f   : > { %v478_v5 = vpop.f32.mrf.mxu0  ;;  %v703_v6 = vpop.f32.mrf.mxu1 }
 0x150   : > { %860 = vst [vmem:[%s1751_s20] sm:$0xff] %v1749_v4 }
 0x151   : > { %v481_v7 = vpop.f32.mrf.mxu0  ;;  %v706_v8 = vpop.f32.mrf.mxu1 }
 0x152   : > { %v1755_v0 = vadd.f32 %v706_v8, %v481_v7 }
 0x153   : > { %v483_v9 = vpop.f32.mrf.mxu0  ;;  %v708_v10 = vpop.f32.mrf.mxu1 }
 0x154   : > { %861 = vst [vmem:[%s1751_s20 + $0x8] sm:$0xff] %v1755_v0 }
 0x155   : > { %v486_v11 = vpop.f32.mrf.mxu0  ;;  %v711_v12 = vpop.f32.mrf.mxu1 }
 0x156   : > { %v1759_v13 = vadd.f32 %v711_v12, %v486_v11 }
 0x157   : > { %v488_v14 = vpop.f32.mrf.mxu0  ;;  %v713_v15 = vpop.f32.mrf.mxu1 }
 0x158   : > { %862 = vst [vmem:[%s1751_s20 + $0x10] sm:$0xff] %v1759_v13 }
 0x159   : > { %v491_v16 = vpop.f32.mrf.mxu0  ;;  %v716_v17 = vpop.f32.mrf.mxu1 }
 0x15a   : > { %v1763_v18 = vadd.f32 %v716_v17, %v491_v16 }
 0x15b   : > { %v493_v19 = vpop.f32.mrf.mxu0  ;;  %v718_v20 = vpop.f32.mrf.mxu1 }
 0x15c   : > { %863 = vst [vmem:[%s1751_s20 + $0x18] sm:$0xff] %v1763_v18 }
 0x15d   : > { %v496_v21 = vpop.f32.mrf.mxu0  ;;  %v721_v22 = vpop.f32.mrf.mxu1 }
 0x15e   : > { %v1767_v23 = vadd.f32 %v721_v22, %v496_v21 }
 0x15f   : > { %v498_v24 = vpop.f32.mrf.mxu0  ;;  %v723_v25 = vpop.f32.mrf.mxu1 }
 0x160   : > { %864 = vst [vmem:[%s1751_s20 + $0x20] sm:$0xff] %v1767_v23  ;;  %v930_v24 = vmul.f32 %v1755_v0, %v1755_v0 }
 0x161   : > { %v501_v26 = vpop.f32.mrf.mxu0  ;;  %v726_v27 = vpop.f32.mrf.mxu1 }
 0x162   : > { %v1771_v28 = vadd.f32 %v726_v27, %v501_v26 }
 0x163   : > { %v503_v29 = vpop.f32.mrf.mxu0  ;;  %v728_v30 = vpop.f32.mrf.mxu1 }
 0x164   : > { %865 = vst [vmem:[%s1751_s20 + $0x28] sm:$0xff] %v1771_v28  ;;  %v929_v29 = vmul.f32 %v1749_v4, %v1749_v4  ;;  %v892_v30 = vadd.f32 %v1755_v0, %v1749_v4  ;;  %v933_v0 = vmul.f32 %v1767_v23, %v1767_v23 }
 0x165   : > { %v506_v31 = vpop.f32.mrf.mxu0  ;;  %v731_v32 = vpop.f32.mrf.mxu1 }
 0x166   : > { %v1775_v33 = vadd.f32 %v731_v32, %v506_v31  ;;  %v931_v31 = vmul.f32 %v1759_v13, %v1759_v13 }
 0x167   : > { %v508_v34 = vpop.f32.mrf.mxu0  ;;  %v733_v35 = vpop.f32.mrf.mxu1 }
 0x168   : > { %866 = vst [vmem:[%s1751_s20 + $0x30] sm:$0xff] %v1775_v33  ;;  %v961_v35 = vadd.f32 %v930_v24, %v929_v29 }
 0x169   : > { %v511_v36 = vpop.f32.mrf.mxu0  ;;  %v736_v37 = vpop.f32.mrf.mxu1 }
 0x16a   : > { %v1779_v38 = vadd.f32 %v736_v37, %v511_v36  ;;  %v893_v36 = vadd.f32 %v892_v30, %v1759_v13  ;;  %v932_v37 = vmul.f32 %v1763_v18, %v1763_v18 }
 0x16b   : > { %v513_v39 = vpop.f32.mrf.mxu0  ;;  %v738_v40 = vpop.f32.mrf.mxu1 }
 0x16c   : > { %867 = vst [vmem:[%s1751_s20 + $0x38] sm:$0xff] %v1779_v38  ;;  %v894_v4 = vadd.f32 %v893_v36, %v1763_v18 }
 0x16d   : > { %v516_v41 = vpop.f32.mrf.mxu0  ;;  %v741_v42 = vpop.f32.mrf.mxu1 }
 0x16e   : > { %v1783_v43 = vadd.f32 %v741_v42, %v516_v41  ;;  %v962_v42 = vadd.f32 %v961_v35, %v931_v31  ;;  %v895_v13 = vadd.f32 %v894_v4, %v1767_v23 }
 0x16f   : > { %v518_v44 = vpop.f32.mrf.mxu0  ;;  %v743_v45 = vpop.f32.mrf.mxu1 }
 0x170   : > { %868 = vst [vmem:[%s1751_s20 + $0x40] sm:$0xff] %v1783_v43  ;;  %v896_v18 = vadd.f32 %v895_v13, %v1771_v28 }
 0x171   : > { %v521_v46 = vpop.f32.mrf.mxu0  ;;  %v746_v47 = vpop.f32.mrf.mxu1 }
 0x172   : > { %v1787_v48 = vadd.f32 %v746_v47, %v521_v46  ;;  %v963_v46 = vadd.f32 %v962_v42, %v932_v37  ;;  %v934_v47 = vmul.f32 %v1771_v28, %v1771_v28  ;;  %v897_v23 = vadd.f32 %v896_v18, %v1775_v33 }
 0x173   : > { %v523_v49 = vpop.f32.mrf.mxu0  ;;  %v748_v50 = vpop.f32.mrf.mxu1 }
 0x174   : > { %869 = vst [vmem:[%s1751_s20 + $0x48] sm:$0xff] %v1787_v48  ;;  %v898_v28 = vadd.f32 %v897_v23, %v1779_v38 }
 0x175   : > { %v526_v51 = vpop.f32.mrf.mxu0  ;;  %v751_v52 = vpop.f32.mrf.mxu1 }
 0x176   : > { %v1791_v53 = vadd.f32 %v751_v52, %v526_v51  ;;  %v964_v52 = vadd.f32 %v963_v46, %v933_v0 }
 0x177   : > { %v528_v54 = vpop.f32.mrf.mxu0  ;;  %v753_v55 = vpop.f32.mrf.mxu1 }
 0x178   : > { %870 = vst [vmem:[%s1751_s20 + $0x50] sm:$0xff] %v1791_v53  ;;  %v935_v54 = vmul.f32 %v1775_v33, %v1775_v33  ;;  %v899_v33 = vadd.f32 %v898_v28, %v1783_v43 }
 0x179   : > { %v531_v56 = vpop.f32.mrf.mxu0  ;;  %v756_v57 = vpop.f32.mrf.mxu1 }
 0x17a   : > { %v1795_v58 = vadd.f32 %v756_v57, %v531_v56  ;;  %v965_v57 = vadd.f32 %v964_v52, %v934_v47 }
 0x17b   : > { %v533_v59 = vpop.f32.mrf.mxu0  ;;  %v758_v60 = vpop.f32.mrf.mxu1 }
 0x17c   : > { %871 = vst [vmem:[%s1751_s20 + $0x58] sm:$0xff] %v1795_v58  ;;  %v936_v59 = vmul.f32 %v1779_v38, %v1779_v38  ;;  %v900_v38 = vadd.f32 %v899_v33, %v1787_v48 }
 0x17d   : > { %v536_v61 = vpop.f32.mrf.mxu0  ;;  %v761_v62 = vpop.f32.mrf.mxu1 }
 0x17e   : > { %v1799_v63 = vadd.f32 %v761_v62, %v536_v61 }
 0x17f   : > { %v538_v1 = vpop.f32.mrf.mxu0  ;;  %v763_v2 = vpop.f32.mrf.mxu1 }
 0x180   : > { %872 = vst [vmem:[%s1751_s20 + $0x60] sm:$0xff] %v1799_v63  ;;  %v966_v1 = vadd.f32 %v965_v57, %v935_v54  ;;  %v937_v2 = vmul.f32 %v1783_v43, %v1783_v43  ;;  %v901_v43 = vadd.f32 %v900_v38, %v1791_v53  ;;  %v941_v29 = vmul.f32 %v1799_v63, %v1799_v63 }
 0x181   : > { %v541_v3 = vpop.f32.mrf.mxu0  ;;  %v766_v5 = vpop.f32.mrf.mxu1 }
 0x182   : > { %v1803_v6 = vadd.f32 %v766_v5, %v541_v3 }
 0x183   : > { %v543_v7 = vpop.f32.mrf.mxu0  ;;  %v768_v8 = vpop.f32.mrf.mxu1 }
 0x184   : > { %873 = vst [vmem:[%s1751_s20 + $0x68] sm:$0xff] %v1803_v6  ;;  %v967_v7 = vadd.f32 %v966_v1, %v936_v59  ;;  %v938_v8 = vmul.f32 %v1787_v48, %v1787_v48  ;;  %v902_v48 = vadd.f32 %v901_v43, %v1795_v58 }
 0x185   : > { %v546_v9 = vpop.f32.mrf.mxu0  ;;  %v771_v10 = vpop.f32.mrf.mxu1 }
 0x186   : > { %v1807_v11 = vadd.f32 %v771_v10, %v546_v9 }
 0x187   : > { %v548_v12 = vpop.f32.mrf.mxu0  ;;  %v773_v14 = vpop.f32.mrf.mxu1 }
 0x188   : > { %874 = vst [vmem:[%s1751_s20 + $0x70] sm:$0xff] %v1807_v11  ;;  %v968_v14 = vadd.f32 %v967_v7, %v937_v2 }
 0x189   : > { %v551_v15 = vpop.f32.mrf.mxu0  ;;  %v776_v16 = vpop.f32.mrf.mxu1 }
 0x18a   : > { %v1811_v17 = vadd.f32 %v776_v16, %v551_v15  ;;  %v939_v15 = vmul.f32 %v1791_v53, %v1791_v53  ;;  %v903_v53 = vadd.f32 %v902_v48, %v1799_v63 }
 0x18b   : > { %v553_v19 = vpop.f32.mrf.mxu0  ;;  %v778_v20 = vpop.f32.mrf.mxu1 }
 0x18c   : > { %875 = vst [vmem:[%s1751_s20 + $0x78] sm:$0xff] %v1811_v17  ;;  %v969_v20 = vadd.f32 %v968_v14, %v938_v8  ;;  %v944_v63 = vmul.f32 %v1811_v17, %v1811_v17 }
 0x18d   : > { %v556_v21 = vpop.f32.mrf.mxu0  ;;  %v781_v22 = vpop.f32.mrf.mxu1 }
 0x18e   : > { %v1817_v25 = vadd.f32 %v781_v22, %v556_v21  ;;  %v940_v21 = vmul.f32 %v1795_v58, %v1795_v58  ;;  %v904_v58 = vadd.f32 %v903_v53, %v1803_v6 }
 0x18f   : > { %v558_v26 = vpop.f32.mrf.mxu0  ;;  %v783_v27 = vpop.f32.mrf.mxu1 }
 0x190   : > { %876 = vst [vmem:[%s1751_s20 + $0x80] sm:$0xff] %v1817_v25  ;;  %v970_v27 = vadd.f32 %v969_v20, %v939_v15 }
 0x191   : > { %v561_v32 = vpop.f32.mrf.mxu0  ;;  %v786_v34 = vpop.f32.mrf.mxu1 }
 0x192   : > { %v1830_v39 = vadd.f32 %v786_v34, %v561_v32  ;;  %v971_v32 = vadd.f32 %v970_v27, %v940_v21  ;;  %v942_v34 = vmul.f32 %v1803_v6, %v1803_v6  ;;  %v945_v6 = vmul.f32 %v1817_v25, %v1817_v25 }
 0x193   : > { %v563_v40 = vpop.f32.mrf.mxu0  ;;  %v788_v41 = vpop.f32.mrf.mxu1 }
 0x194   : > { %877 = vst [vmem:[%s1751_s20 + $0x88] sm:$0xff] %v1830_v39  ;;  %v972_v40 = vadd.f32 %v971_v32, %v941_v29  ;;  %v943_v41 = vmul.f32 %v1807_v11, %v1807_v11 }
 0x195   : > { %v566_v44 = vpop.f32.mrf.mxu0  ;;  %v791_v45 = vpop.f32.mrf.mxu1 }
 0x196   : > { %v1840_v49 = vadd.f32 %v791_v45, %v566_v44  ;;  %v973_v0 = vadd.f32 %v972_v40, %v942_v34  ;;  %v905_v44 = vadd.f32 %v904_v58, %v1807_v11  ;;  %v946_v11 = vmul.f32 %v1830_v39, %v1830_v39 }
 0x197   : > { %v568_v50 = vpop.f32.mrf.mxu0  ;;  %v793_v51 = vpop.f32.mrf.mxu1 }
 0x198   : > { %878 = vst [vmem:[%s1751_s20 + $0x90] sm:$0xff] %v1840_v49  ;;  %v974_v47 = vadd.f32 %v973_v0, %v943_v41  ;;  %v906_v50 = vadd.f32 %v905_v44, %v1811_v17  ;;  %v947_v17 = vmul.f32 %v1840_v49, %v1840_v49 }
 0x199   : > { %v571_v55 = vpop.f32.mrf.mxu0  ;;  %v796_v56 = vpop.f32.mrf.mxu1 }
 0x19a   : > { %v1850_v60 = vadd.f32 %v796_v56, %v571_v55  ;;  %v975_v18 = vadd.f32 %v974_v47, %v944_v63  ;;  %v907_v54 = vadd.f32 %v906_v50, %v1817_v25 }
 0x19b   : > { %v573_v61 = vpop.f32.mrf.mxu0  ;;  %v798_v62 = vpop.f32.mrf.mxu1 }
 0x19c   : > { %879 = vst [vmem:[%s1751_s20 + $0x98] sm:$0xff] %v1850_v60  ;;  %v976_v23 = vadd.f32 %v975_v18, %v945_v6  ;;  %v908_v59 = vadd.f32 %v907_v54, %v1830_v39  ;;  %v948_v25 = vmul.f32 %v1850_v60, %v1850_v60 }
 0x19d   : > { %v576_v3 = vpop.f32.mrf.mxu0  ;;  %v801_v5 = vpop.f32.mrf.mxu1 }
 0x19e   : > { %v1860_v9 = vadd.f32 %v801_v5, %v576_v3  ;;  %v977_v1 = vadd.f32 %v976_v23, %v946_v11  ;;  %v909_v28 = vadd.f32 %v908_v59, %v1840_v49 }
 0x19f   : > { %v578_v10 = vpop.f32.mrf.mxu0  ;;  %v803_v12 = vpop.f32.mrf.mxu1 }
 0x1a0   : > { %880 = vst [vmem:[%s1751_s20 + $0xa0] sm:$0xff] %v1860_v9  ;;  %v978_v7 = vadd.f32 %v977_v1, %v947_v17  ;;  %v910_v33 = vadd.f32 %v909_v28, %v1850_v60  ;;  %v949_v39 = vmul.f32 %v1860_v9, %v1860_v9 }
 0x1a1   : > { %v581_v16 = vpop.f32.mrf.mxu0  ;;  %v806_v19 = vpop.f32.mrf.mxu1 }
 0x1a2   : > { %v1870_v22 = vadd.f32 %v806_v19, %v581_v16  ;;  %v979_v12 = vadd.f32 %v978_v7, %v948_v25  ;;  %v911_v14 = vadd.f32 %v910_v33, %v1860_v9 }
 0x1a3   : > { %v583_v24 = vpop.f32.mrf.mxu0  ;;  %v808_v26 = vpop.f32.mrf.mxu1 }
 0x1a4   : > { %881 = vst [vmem:[%s1751_s20 + $0xa8] sm:$0xff] %v1870_v22  ;;  %v950_v49 = vmul.f32 %v1870_v22, %v1870_v22  ;;  %v980_v19 = vadd.f32 %v979_v12, %v949_v39  ;;  %v912_v20 = vadd.f32 %v911_v14, %v1870_v22 }
 0x1a5   : > { %v586_v30 = vpop.f32.mrf.mxu0  ;;  %v811_v31 = vpop.f32.mrf.mxu1 }
 0x1a6   : > { %v812_v35 = vadd.f32 %v811_v31, %v586_v30  ;;  %v981_v24 = vadd.f32 %v980_v19, %v950_v49 }
 0x1a7   : > { %v588_v36 = vpop.f32.mrf.mxu0  ;;  %v813_v37 = vpop.f32.mrf.mxu1 }
 0x1a8   : > { %882 = vst [vmem:[%s1751_s20 + $0xb0] sm:$0xff] %v812_v35  ;;  %v951_v60 = vmul.f32 %v812_v35, %v812_v35  ;;  %v913_v26 = vadd.f32 %v912_v20, %v812_v35 }
 0x1a9   : > { %v591_v42 = vpop.f32.mrf.mxu0  ;;  %v816_v4 = vpop.f32.mrf.mxu1 }
 0x1aa   : > { %v817_v45 = vadd.f32 %v816_v4, %v591_v42  ;;  %v982_v30 = vadd.f32 %v981_v24, %v951_v60 }
 0x1ab   : > { %v593_v46 = vpop.f32.mrf.mxu0  ;;  %v818_v13 = vpop.f32.mrf.mxu1 }
 0x1ac   : > { %883 = vst [vmem:[%s1751_s20 + $0xb8] sm:$0xff] %v817_v45  ;;  %v952_v27 = vmul.f32 %v817_v45, %v817_v45  ;;  %v914_v31 = vadd.f32 %v913_v26, %v817_v45 }
 0x1ad   : > { %v596_v51 = vpop.f32.mrf.mxu0  ;;  %v821_v52 = vpop.f32.mrf.mxu1 }
 0x1ae   : > { %v822_v55 = vadd.f32 %v821_v52, %v596_v51  ;;  %v983_v36 = vadd.f32 %v982_v30, %v952_v27 }
 0x1af   : > { %v598_v56 = vpop.f32.mrf.mxu0  ;;  %v823_v57 = vpop.f32.mrf.mxu1 }
 0x1b0   : > { %884 = vst [vmem:[%s1751_s20 + $0xc0] sm:$0xff] %v822_v55  ;;  %v953_v32 = vmul.f32 %v822_v55, %v822_v55  ;;  %v915_v37 = vadd.f32 %v914_v31, %v822_v55 }
 0x1b1   : > { %v601_v61 = vpop.f32.mrf.mxu0  ;;  %v826_v62 = vpop.f32.mrf.mxu1 }
 0x1b2   : > { %v827_v2 = vadd.f32 %v826_v62, %v601_v61  ;;  %v984_v42 = vadd.f32 %v983_v36, %v953_v32 }
 0x1b3   : > { %v603_v3 = vpop.f32.mrf.mxu0  ;;  %v828_v5 = vpop.f32.mrf.mxu1 }
 0x1b4   : > { %885 = vst [vmem:[%s1751_s20 + $0xc8] sm:$0xff] %v827_v2  ;;  %v954_v22 = vmul.f32 %v827_v2, %v827_v2  ;;  %v916_v35 = vadd.f32 %v915_v37, %v827_v2 }
 0x1b5   : > { %v606_v8 = vpop.f32.mrf.mxu0  ;;  %v831_v10 = vpop.f32.mrf.mxu1 }
 0x1b6   : > { %v832_v38 = vadd.f32 %v831_v10, %v606_v8  ;;  %v985_v63 = vadd.f32 %v984_v42, %v954_v22 }
 0x1b7   : > { %v608_v15 = vpop.f32.mrf.mxu0  ;;  %v833_v16 = vpop.f32.mrf.mxu1 }
 0x1b8   : > { %886 = vst [vmem:[%s1751_s20 + $0xd0] sm:$0xff] %v832_v38  ;;  %v955_v4 = vmul.f32 %v832_v38, %v832_v38  ;;  %v917_v45 = vadd.f32 %v916_v35, %v832_v38 }
 0x1b9   : > { %v611_v43 = vpop.f32.mrf.mxu0  ;;  %v836_v21 = vpop.f32.mrf.mxu1 }
 0x1ba   : > { %v837_v48 = vadd.f32 %v836_v21, %v611_v43  ;;  %v986_v6 = vadd.f32 %v985_v63, %v955_v4 }
 0x1bb   : > { %v613_v29 = vpop.f32.mrf.mxu0  ;;  %v838_v9 = vpop.f32.mrf.mxu1 }
 0x1bc   : > { %887 = vst [vmem:[%s1751_s20 + $0xd8] sm:$0xff] %v837_v48  ;;  %v956_v46 = vmul.f32 %v837_v48, %v837_v48  ;;  %v918_v51 = vadd.f32 %v917_v45, %v837_v48 }
 0x1bd   : > { %v616_v53 = vpop.f32.mrf.mxu0  ;;  %v841_v34 = vpop.f32.mrf.mxu1 }
 0x1be   : > { %v842_v40 = vadd.f32 %v841_v34, %v616_v53  ;;  %v987_v11 = vadd.f32 %v986_v6, %v956_v46 }
 0x1bf   : > { %v618_v58 = vpop.f32.mrf.mxu0  ;;  %v843_v41 = vpop.f32.mrf.mxu1 }
 0x1c0   : > { %888 = vst [vmem:[%s1751_s20 + $0xe0] sm:$0xff] %v842_v40  ;;  %v957_v52 = vmul.f32 %v842_v40, %v842_v40  ;;  %v919_v55 = vadd.f32 %v918_v51, %v842_v40 }
 0x1c1   : > { %v621_v0 = vpop.f32.mrf.mxu0  ;;  %v846_v44 = vpop.f32.mrf.mxu1 }
 0x1c2   : > { %v847_v13 = vadd.f32 %v846_v44, %v621_v0  ;;  %v988_v17 = vadd.f32 %v987_v11, %v957_v52 }
 0x1c3   : > { %v623_v47 = vpop.f32.mrf.mxu0  ;;  %v848_v50 = vpop.f32.mrf.mxu1 }
 0x1c4   : > { %889 = vst [vmem:[%s1751_s20 + $0xe8] sm:$0xff] %v847_v13  ;;  %v958_v56 = vmul.f32 %v847_v13, %v847_v13  ;;  %v920_v61 = vadd.f32 %v919_v55, %v847_v13 }
 0x1c5   : > { %v626_v18 = vpop.f32.mrf.mxu0  ;;  %v851_v54 = vpop.f32.mrf.mxu1 }
 0x1c6   : > { %v852_v57 = vadd.f32 %v851_v54, %v626_v18  ;;  %v989_v25 = vadd.f32 %v988_v17, %v958_v56 }
 0x1c7   : > { %v628_v23 = vpop.f32.mrf.mxu0  ;;  %v853_v59 = vpop.f32.mrf.mxu1 }
 0x1c8   : > { %890 = vst [vmem:[%s1751_s20 + $0xf0] sm:$0xff] %v852_v57  ;;  %v959_v62 = vmul.f32 %v852_v57, %v852_v57  ;;  %v921_v2 = vadd.f32 %v920_v61, %v852_v57 }
 0x1c9   : > { %v631_v1 = vpop.f32.mrf.mxu0  ;;  %v856_v28 = vpop.f32.mrf.mxu1 }
 0x1ca   : > { %v857_v3 = vadd.f32 %v856_v28, %v631_v1  ;;  %v990_v33 = vadd.f32 %v989_v25, %v959_v62 }
 0x1cb   : > { %v633_v5 = vpop.f32.mrf.mxu0  ;;  %v858_v7 = vpop.f32.mrf.mxu1 }
 0x1cc   : > { %891 = vst [vmem:[%s1751_s20 + $0xf8] sm:$0xff] %v857_v3  ;;  %v922_v39 = vadd.f32 %v921_v2, %v857_v3  ;;  %v960_v8 = vmul.f32 %v857_v3, %v857_v3 }
 0x1cd   : > { %1309 = shalt.err (!%p1306_p0)
}
 0x1ce   : > { %s1310_s11 = scalar_lea.hbm %s1919_s30, 4096  ;;  %s1314_s28 = scalar_lea.hbm %s1990_s2, 16384 }
 0x1cf   : > { %p1311_p5 = scmp.ne.s32.totalorder %s1919_s30, %s1310_s11  ;;  %p1315_p4 = scmp.lt.s32.totalorder %s1919_s30, %s1990_s2 }
 0x1d0   : > { %p1316_p6 = scmp.lt.s32.totalorder %s1314_s28, %s1310_s11 }
 0x1d1   : > { %p1312_p9 = pnand %p1311_p5, %p2007_p10 }
 0x1d2   : > { %p1317_p8 = por %p1316_p6, %p1315_p4 }
 0x1d3   : > { %p1313_p1 = pneg %p1312_p9 }
 0x1d5   : > { %p1318_p3 = pnand %p1317_p8, %p1313_p1 }
 0x1d7   : > { %1321 = shalt.err (!%p1318_p3)
}
 0x1d8   : > { %s1404_s20 = smov 128   ;;  %s1405_s17 = smov 8   ;;  %v923_v10 = vrot.slane %v922_v39, 4  ;;  %v991_v12 = vadd.f32 %v990_v33, %v960_v8  ;;  %vm998_vm0 = vcmask 1040384   ;;  %vm1000_vm1 = vcmask 1041408  }
 0x1d9   : > { %1179 = dma.vmem_to_hbm [thread:$0]  (%p2007_p10), %s1921_s22, 4096, %s1919_s30, %s1004_s4, %s1404_s20, %s1404_s20, %s1405_s17  }
 0x1da   : > { %v924_v14 = vadd.f32 %v923_v10, %v922_v39  ;;  %v992_v49 = vrot.slane %v991_v12, 4  ;;  %s1162_s23 = sshll.u32 %s1542_s26, 3  ;;  %s1167_s25 = sshll.u32 %s1448_s16, 7 }
 0x1db   : > { %s215_s7 = scalar_lea.vmem [#allocation8], %s1162_s23  ;;  %s1952_s4 = scalar_lea.hbm %s1991_s3, %s1167_s25 }
 0x1dc   : > { %v925_v38 = vrot.slane %v924_v14, 2  ;;  %v993_v15 = vadd.f32 %v992_v49, %v991_v12  ;;  %s1038_s8 = sshll.u32 %s215_s7, 4  ;;  %s1009_s9 = scalar_lea.sflag [#allocation9], %s1542_s26  ;;  %s1039_s8 = int_to_ptr.vmem [resolvable:$true] %s1038_s8 }
 0x1dd   : > { %s1322_s10 = scalar_lea.vmem %s1039_s8, 128  ;;  %s1406_s16 = smov [#allocation8]  }
 0x1de   : > { %v926_v16 = vadd.f32 %v925_v38, %v924_v14  ;;  %v994_v19 = vrot.slane %v993_v15, 2  ;;  %p1323_p7 = scmp.ne.s32.totalorder %s1039_s8, %s1322_s10  ;;  %s1326_s11 = sshll.u32 %s1406_s16, 4  ;;  %s1327_s11 = int_to_ptr.vmem [resolvable:$false] %s1326_s11 }
 0x1df   : > { %s1328_s21 = scalar_lea.vmem %s1327_s11, 256  ;;  %p1329_p2 = scmp.lt.s32.totalorder %s1039_s8, %s1327_s11 }
 0x1e0   : > { %v927_v20 = vrot.slane %v926_v16, 1  ;;  %v995_v60 = vadd.f32 %v994_v19, %v993_v15  ;;  %p1324_p11 = pnand %p1323_p7, %p2007_p10  ;;  %p1330_p13 = scmp.lt.s32.totalorder %s1328_s21, %s1322_s10 }
 0x1e2   : > { %v996_v43 = vrot.slane %v995_v60, 1  ;;  %v928_v21 = vadd.f32 %v927_v20, %v926_v16  ;;  %p1325_p12 = pneg %p1324_p11  ;;  %p1331_p0 = por %p1330_p13, %p1329_p2 }
 0x1e4   : > { %v997_v24 = vadd.f32 %v996_v43, %v995_v60  ;;  %p1332_p5 = pnand %p1331_p0, %p1325_p12 }
 0x1e6   : > { %v999_v26 = vsel %vm998_vm0, %v928_v21, %v997_v24 }
 0x1e7   : > { %v1001_v27 = vsel %vm1000_vm1, %v999_v26, 0.0 }
 0x1e8   : > { %1002 = vst [vmem:[%s215_s7] sm:$0xff] %v1001_v27 }
 0x1e9   : > { %1335 = shalt.err (!%p1332_p5)
}
 0x1ea   : > { %s1336_s27 = scalar_lea.hbm %s1952_s4, 128  ;;  %s1340_s29 = scalar_lea.hbm %s1991_s3, 512 }
 0x1eb   : > { %p1337_p9 = scmp.ne.s32.totalorder %s1952_s4, %s1336_s27  ;;  %p1341_p6 = scmp.lt.s32.totalorder %s1952_s4, %s1991_s3 }
 0x1ec   : > { %p1342_p8 = scmp.lt.s32.totalorder %s1340_s29, %s1336_s27 }
 0x1ed   : > { %p1338_p1 = pnand %p1337_p9, %p2007_p10 }
 0x1ee   : > { %p1343_p3 = por %p1342_p8, %p1341_p6 }
 0x1ef   : > { %p1339_p4 = pneg %p1338_p1 }
 0x1f1   : > { %p1344_p7 = pnand %p1343_p3, %p1339_p4 }
 0x1f3   : > { %1347 = shalt.err (!%p1344_p7)
}
 0x1f4   : > { %1180 = dma.vmem_to_hbm [thread:$0]  (%p2007_p10), %s1039_s8, 128, %s1952_s4, %s1009_s9  }
 0x1f5 PF: > { %p1201_p11 = scmp.ge.s32.totalorder %s1394_s15, 2  ;;  %s1050_s17 = sand.u32 1, %s1382_s12  }
 0x1f6   : > { %p2008_p12 = scmp.ne.s32.totalorder %s1997_s19, 0  ;;  %s1051_s23 = scalar_lea.sflag [#allocation4], %s1050_s17 }
 0x1f8   : > { %p1192_p2 = pnand %p1201_p11, %p2008_p12 }
 0x1fa   : > { %p1193_p13 = pneg %p1192_p2 }
 0x1fc   : > { %1373 = dma.done.wait (%p1193_p13), %s1051_s23, 4096  }
 0x1fd   : > { %1375 = vsyncadd (%p1193_p13), %s1051_s23, 4294963200  ;;  %s1060_s25 = scalar_lea.sflag [#allocation9], %s1050_s17 }
 0x1fe   : > { %1377 = dma.done.wait (%p1193_p13), %s1060_s25, 128  }
 0x1ff   : > { %1379 = vsyncadd (%p1193_p13), %s1060_s25, 4294967168  ;;  %p21_p10 = scmp.ge.s32.totalorder %s1480_s24, 6   ;;  %s2009_s12 = smov %s1386_s13 }
 0x200   : > { %s2010_s13 = smov %s1390_s14  ;;  %s2011_s14 = smov %s1497_s5 }
 0x201   : > { %s2012_s15 = smov %s1480_s24  ;;  %23 = sbr.rel (!%p21_p10) target bundleno = 8 (0x8), region = 94 }
 0x206   :  { %1065 = vsyncpa [#allocation3], 1 }
 0x207   :  { %1067 = vsyncpa [#allocation3 + $0x1], 1 }
 0x208   :  { %1068 = vsyncpa [#allocation6], 1 }
 0x209   :  { %1069 = vsyncpa [#allocation4], 1 }
 0x20a   :  { %1071 = vsyncpa [#allocation4 + $0x1], 1 }
 0x20b   :  { %1072 = vsyncpa [#allocation9], 1 }
 0x20c   :  { %1074 = vsyncpa [#allocation9 + $0x1], 1 }

</bundles_post_ra>
